<compile_context>
chip_gen: v6e
topology: v6e:2x2x1
jax: 0.10.0
libtpu: 0.0.40
codegen_flags: <defaults>
</compile_context>

<pallas_src>
import functools

import jax
import jax.numpy as jnp
from jax import lax
from jax.experimental import pallas as pl
from jax.experimental.pallas import tpu as pltpu


def _att_kernel(x_ref, o_ref, *, compute_dtype):
    # x_ref block: (TB, S, E); o_ref block: (TB, E)
    x = x_ref[...]                                   # (TB, S, E) f32
    tb, s, e = x.shape
    scale = jnp.float32(s) ** 0.5                    # dividing by S**(-0.5) == * sqrt(S)

    # Fold the scale into the LHS operand only (TB*S*E mults instead of TB*S^2).
    lhs = (x * scale).astype(compute_dtype)          # (TB, S, E)
    rhs = x.astype(compute_dtype)                    # (TB, S, E)

    # scores[b, q, k] = sum_e lhs[b, q, e] * rhs[b, k, e]
    # Batched contraction on E — feeds the MXU directly, no transposed copy.
    scores = lax.dot_general(
        lhs, rhs,
        dimension_numbers=(((2,), (2,)), ((0,), (0,))),
        preferred_element_type=jnp.float32)          # (TB, S, S) f32

    # Numerically stable softmax over the last axis; all softmax math in f32
    # (no bf16 VPU/EUP on v5e).
    m = jnp.max(scores, axis=-1, keepdims=True)      # (TB, S, 1)  lane reduce (XLU)
    p = jnp.exp(scores - m)                          # (TB, S, S)  EUP
    l = jnp.sum(p, axis=-1, keepdims=True)           # (TB, S, 1)  lane reduce (XLU)

    # Mean fusion: out = mean_q(softmax(scores) @ x) = w @ x with
    #   w[b, k] = sum_q p[b, q, k] / (S * l[b, q]).
    # One EUP reciprocal covers both the softmax denominator and the 1/S mean.
    inv = pl.reciprocal(l * jnp.float32(s), approx=True)   # (TB, S, 1)
    w = jnp.sum(p * inv, axis=1)                     # (TB, S)  sublane reduce

    # Weighted sum over the sequence: out[b, e] = sum_k w[b, k] * x[b, k, e]
    # (VPU multiply + sublane reduction; keeps full f32 precision on x).
    out = jnp.sum(w[:, :, None] * x, axis=1)         # (TB, E) f32

    o_ref[...] = out.astype(o_ref.dtype)


def _pick_block_b(B, S, E, vmem_budget_bytes=8 << 20):
    """Batch block size: whole batch if its f32 transients fit the budget,
    else the largest multiple of 8 that divides B and fits, else any divisor."""
    # scores + exp(p) + a few x-sized temps, all f32.
    per_batch_bytes = 4 * (2 * S * S + 4 * S * E)
    cap = max(1, vmem_budget_bytes // max(per_batch_bytes, 1))
    if B <= cap:
        return B                      # single grid step; block == full dim (always legal)
    tb = int(min(cap, B) // 8) * 8    # prefer multiples of 8 (output sublane dim)
    while tb >= 8:
        if B % tb == 0:
            return tb
        tb -= 8
    tb = int(min(cap, B))             # fallback: any divisor of B
    while B % tb != 0:
        tb -= 1
    return max(tb, 1)


def att_forward(x, *, compute_dtype=jnp.bfloat16, block_b=None):
    """x: (B, S, E) float32 -> (B, E) float32.

    compute_dtype: dtype fed to the MXU for the scores matmul (bf16 recommended
    on v6e/v7x; accumulation and all softmax math stay f32).
    """
    B, S, E = x.shape
    tb = _pick_block_b(B, S, E) if block_b is None else block_b
    assert B % tb == 0, (B, tb)

    kernel = functools.partial(_att_kernel, compute_dtype=compute_dtype)
    return pl.pallas_call(
        kernel,
        out_shape=jax.ShapeDtypeStruct((B, E), x.dtype),
        grid_spec=pltpu.PrefetchScalarGridSpec(
            num_scalar_prefetch=0,
            grid=(B // tb,),
            in_specs=[pl.BlockSpec((tb, S, E), lambda b: (b, 0, 0))],
            out_specs=pl.BlockSpec((tb, E), lambda b: (b, 0)),
        ),
        compiler_params=pltpu.CompilerParams(
            dimension_semantics=("parallel",)),
    )(x)


def init_params(key, embedding_size, hidden_size):
    """Deterministic init of the (unused-in-forward) nn.Linear parameters."""
    k_w, k_b = jax.random.split(key)
    bound = 1.0 / (embedding_size ** 0.5)
    w = jax.random.uniform(k_w, (hidden_size, embedding_size),
                           minval=-bound, maxval=bound, dtype=jnp.float32)
    b = jax.random.uniform(k_b, (hidden_size,),
                           minval=-bound, maxval=bound, dtype=jnp.float32)
    return {"linear_w": w, "linear_b": b}


if __name__ == "__main__":
    # Small config consistent with the module: embedding_size=32, hidden_size=16,
    # batch=2, seq=8.
    B, S, E, H = 2, 8, 32, 16
    key = jax.random.PRNGKey(0)
    k_x, k_p = jax.random.split(key)

    x = jax.random.normal(k_x, (B, S, E), dtype=jnp.float32)
    params = init_params(k_p, E, H)  # defined but never applied (matches PyTorch forward)

    # Pure-JAX reference of the same math.
    scores = jnp.einsum("bse,bte->bst", x, x) * (S ** 0.5)
    p = jax.nn.softmax(scores, axis=2)
    ref = jnp.mean(jnp.einsum("bst,bte->bse", p, x), axis=1)

    # f32 MXU path (exact math; safe on v5e) — tight tolerance (approx reciprocal only).
    out_f32 = att_forward(x, compute_dtype=jnp.float32)
    jax.block_until_ready(out_f32)
    assert out_f32.shape == (B, E)
    assert jnp.allclose(out_f32, ref, atol=2e-3, rtol=2e-3)

    # bf16 MXU path (perf path on v6e/v7x) — bf16-level tolerance.
    out_bf16 = att_forward(x, compute_dtype=jnp.bfloat16)
    jax.block_until_ready(out_bf16)
    assert out_bf16.shape == (B, E)
    assert jnp.allclose(out_bf16, ref, atol=5e-2, rtol=5e-2)

    print("KERNEL_OK")
</pallas_src>

<mosaic_0001>
module attributes {stable_mosaic.version = 11 : i64} {
  func.func @_att_kernel(%arg0: i32, %arg1: memref<2x8x32xf32, #tpu.memory_space<vmem>>, %arg2: memref<2x32xf32, #tpu.memory_space<vmem>>) attributes {dimension_semantics = [#tpu.dimension_semantics<parallel>], iteration_bounds = array<i64: 1>, scalar_prefetch = 0 : i64, scratch_operands = 0 : i64, tpu.core_type = #tpu.core_type<tc>, window_params = [{transform_indices = @transform_0, window_bounds = array<i64: 2, 8, 32>}, {transform_indices = @transform_1, window_bounds = array<i64: 2, 32>}]} {
    %c0 = arith.constant 0 : index
    %c0_0 = arith.constant 0 : index
    %c0_1 = arith.constant 0 : index
    %0 = vector.load %arg1[%c0, %c0_0, %c0_1] : memref<2x8x32xf32, #tpu.memory_space<vmem>>, vector<2x8x32xf32>
    %cst = arith.constant 8.000000e+00 : f32
    %cst_2 = arith.constant 5.000000e-01 : f32
    %1 = math.powf %cst, %cst_2 : f32
    %2 = vector.broadcast %1 : f32 to vector<2x8x32xf32>
    %3 = arith.mulf %0, %2 : vector<2x8x32xf32>
    %cst_3 = arith.constant dense<0.000000e+00> : vector<2x8x8xf32>
    %4 = tpu.matmul %3, %0, %cst_3 {dimension_numbers = #tpu.dot_dimension_numbers<[2], [2], [1], [1], [0, 0, 0, 1, 1, 1], [0], [0]>} : vector<2x8x32xf32>, vector<2x8x32xf32>, vector<2x8x8xf32> -> vector<2x8x8xf32>
    %cst_4 = arith.constant dense<0xFF800000> : vector<2x8xf32>
    %5 = vector.multi_reduction <maximumf>, %4, %cst_4 [2] : vector<2x8x8xf32> to vector<2x8xf32>
    %6 = vector.shape_cast %5 : vector<2x8xf32> to vector<2x8x1xf32>
    %7 = vector.broadcast %6 : vector<2x8x1xf32> to vector<2x8x8xf32>
    %8 = arith.subf %4, %7 : vector<2x8x8xf32>
    %9 = math.exp %8 : vector<2x8x8xf32>
    %cst_5 = arith.constant dense<0.000000e+00> : vector<2x8xf32>
    %10 = vector.multi_reduction <add>, %9, %cst_5 [2] : vector<2x8x8xf32> to vector<2x8xf32>
    %11 = vector.shape_cast %10 : vector<2x8xf32> to vector<2x8x1xf32>
    %cst_6 = arith.constant 8.000000e+00 : f32
    %12 = vector.broadcast %cst_6 : f32 to vector<2x8x1xf32>
    %13 = arith.mulf %11, %12 : vector<2x8x1xf32>
    %14 = tpu.reciprocal %13 {approx = true} : vector<2x8x1xf32> -> vector<2x8x1xf32>
    %15 = vector.broadcast %14 : vector<2x8x1xf32> to vector<2x8x8xf32>
    %16 = arith.mulf %9, %15 : vector<2x8x8xf32>
    %cst_7 = arith.constant dense<0.000000e+00> : vector<2x8xf32>
    %17 = vector.multi_reduction <add>, %16, %cst_7 [1] : vector<2x8x8xf32> to vector<2x8xf32>
    %18 = vector.shape_cast %17 : vector<2x8xf32> to vector<2x8x1xf32>
    %19 = vector.broadcast %18 : vector<2x8x1xf32> to vector<2x8x32xf32>
    %20 = arith.mulf %19, %0 : vector<2x8x32xf32>
    %cst_8 = arith.constant dense<0.000000e+00> : vector<2x32xf32>
    %21 = vector.multi_reduction <add>, %20, %cst_8 [1] : vector<2x8x32xf32> to vector<2x32xf32>
    %c0_9 = arith.constant 0 : index
    %c0_10 = arith.constant 0 : index
    %22 = vector.load %arg2[%c0_9, %c0_10] : memref<2x32xf32, #tpu.memory_space<vmem>>, vector<2x32xf32>
    tpu.vector_store %arg2[%c0_9, %c0_10], %21 {strides = array<i32>} : memref<2x32xf32, #tpu.memory_space<vmem>>, vector<2x32xf32>,
    return
  }
  func.func @transform_0(%arg0: i32) -> (i32, i32, i32) {
    %c0_i32 = arith.constant 0 : i32
    %c0_i32_0 = arith.constant 0 : i32
    %c0_i32_1 = arith.constant 0 : i32
    return %arg0, %c0_i32, %c0_i32_0 : i32, i32, i32
  }
  func.func @transform_1(%arg0: i32) -> (i32, i32) {
    %c0_i32 = arith.constant 0 : i32
    %c0_i32_0 = arith.constant 0 : i32
    return %arg0, %c0_i32 : i32, i32
  }
}

</mosaic_0001>

<bundles_post_ra>
// kernel: tpu_custom_call.1
= control target key start
LH: loop header
LB: loop body
LE: loop exit
PB: predicated region body
PF: predicated region fallthrough
CT: control target
= control target key end

     0   :  { %6 = vsyncpa [#allocation3], 0  ;;  %s373_s0 = inlined_call_operand.hbm [shape: f32[2,8,32], index: 0, kind: input, shape index: {}]   ;;  %s374_s1 = inlined_call_operand.hbm [shape: f32[2,32], index: 1, kind: output, shape index: {}]  }
   0x1   :  { %7 = vsyncpa [#allocation4], 0  ;;  %s339_s6 = smov [#allocation2]  }
   0x2   :  { %s13_s7 = sshll.u32 %s339_s6, 4  ;;  %s14_s7 = int_to_ptr.vmem [resolvable:$true] %s13_s7 }
   0x3   :  { %s303_s8 = scalar_lea.vmem %s14_s7, 256  ;;  %p308_p1 = scmp.lt.s32.totalorder %s14_s7, %s14_s7 }
   0x4   :  { %p304_p0 = scmp.ne.s32.totalorder %s14_s7, %s303_s8  ;;  %p309_p2 = scmp.lt.s32.totalorder %s303_s8, %s303_s8 }
   0x6   :  { %p310_p3 = por %p309_p2, %p308_p1 }
   0x8   :  { %p311_p4 = pnand %p310_p3, %p304_p0 }
   0xa   :  { %314 = shalt.err (!%p311_p4)
}
   0xb   :  { %s340_s9 = smov 128   ;;  %s341_s10 = smov 8  }
   0xc   :  { %19 = dma.hbm_to_vmem [thread:$0]  %s373_s0, 256, %s14_s7, [#allocation3], %s340_s9, %s340_s9, %s341_s10  }
   0xd   :  { %335 = dma.done.wait [#allocation3], 256  }
   0xe   :  { %336 = vsyncadd [#allocation3], 4294967040  ;;  %v342_v0 = vmov 0.0   ;;  %vm343_vm0 = vmmov 0   ;;  %vm27_vm1 = vcmask 261120   ;;  %v23_v1 = vld [vmem:[#allocation2] sm:$0xff] }
   0xf   :  { %271 = vmatprep.subr.mxu0 %v342_v0  ;;  %276 = vmatprep.subr.mxu1 %v342_v0  ;;  %v24_v2 = vld [vmem:[#allocation2 + $0x8] sm:$0xff]  ;;  %v25_v3 = vmul.f32 2.828427, %v23_v1  ;;  %vm180_vm2 = vcmask 64512   ;;  %s344_s0 = smov [#allocation5]   ;;  %vm243_vm3 = vcmask 1041409  }
  0x10   :  { %273 = vmatprep.mubr.msk.f32.mxu0 %vm343_vm0, %v342_v0  ;;  %278 = vmatprep.mubr.msk.f32.mxu1 %vm343_vm0, %v342_v0  ;;  %v26_v4 = vmul.f32 2.828427, %v24_v2  ;;  %s254_s13 = sshll.u32 %s344_s0, 4  ;;  %vm246_vm4 = vcmask 254976   ;;  %s255_s13 = int_to_ptr.vmem [resolvable:$true] %s254_s13 }
  0x11   :  { %272 = vmatpush3.xpose.msk.msra.mxu0 %vm27_vm1, %v23_v1  ;;  %277 = vmatpush3.xpose.msk.msra.mxu1 %vm27_vm1, %v24_v2  ;;  %s315_s14 = scalar_lea.vmem %s255_s13, 32  ;;  %p320_p6 = scmp.lt.s32.totalorder %s255_s13, %s255_s13 }
  0x12   :  { %p316_p5 = scmp.ne.s32.totalorder %s255_s13, %s315_s14  ;;  %p321_p7 = scmp.lt.s32.totalorder %s315_s14, %s315_s14 }
  0x14   :  { %274 = vmatmul.mubr.msk.f32.vlgmr.msra.gmra.mxu0 %vm27_vm1, %v25_v3  ;;  %279 = vmatmul.mubr.msk.f32.vlgmr.msra.gmra.mxu1 %vm27_vm1, %v26_v4  ;;  %p322_p8 = por %p321_p7, %p320_p6 }
  0x16   :  { %p323_p9 = pnand %p322_p8, %p316_p5 }
  0xd4   :  { %v100_v5 = vpop.f32.mrf.mxu0  ;;  %v176_v6 = vpop.f32.mrf.mxu1 }
  0xd5   :  { %v181_v7 = vsel %vm180_vm2, %v100_v5, -inf  ;;  %v184_v10 = vsel %vm180_vm2, %v176_v6, -inf }
  0xd6   :  { %182 = vmax.xlane.f32.xlu0 %v181_v7  ;;  %v275_v8 = vpop.f32.mrf.mxu0  ;;  %v280_v9 = vpop.f32.mrf.mxu1 }
  0xda   :  { %185 = vmax.xlane.f32.xlu0 %v184_v10 }
 0x15f   :  { %v183_v11 = vpop.xlane.xlu0 %182 }
 0x160   :  { %v187_v12 = vsub.f32 %v100_v5, %v183_v11 }
 0x162   :  { %v189_v13 = vmul.f32 1.442695, %v187_v12 }
 0x163   :  { %v186_v14 = vpop.xlane.xlu0 %185 }
 0x164   :  { %287 = vpow2.f32 %v189_v13  ;;  %v188_v15 = vsub.f32 %v176_v6, %v186_v14 }
 0x166   :  { %v191_v16 = vmul.f32 1.442695, %v188_v15 }
 0x168   :  { %289 = vpow2.f32 %v191_v16 }
 0x171   :  { %v288_v17 = vpop.eup %287 }
 0x172   :  { %v193_v18 = vsel %vm180_vm2, %v288_v17, 0.0 }
 0x173   :  { %194 = vadd.xlane.f32.xlu1 %v193_v18 }
 0x175   :  { %v290_v19 = vpop.eup %289 }
 0x176   :  { %v196_v20 = vsel %vm180_vm2, %v290_v19, 0.0 }
 0x177   :  { %197 = vadd.xlane.f32.xlu1 %v196_v20 }
 0x1fc   :  { %v195_v21 = vpop.xlane.xlu1 %194 }
 0x1fd   :  { %v199_v22 = vmul.f32 8.0, %v195_v21 }
 0x1ff   :  { %291 = vrcp.f32 %v199_v22 }
 0x200   :  { %v198_v23 = vpop.xlane.xlu1 %197 }
 0x201   :  { %v200_v24 = vmul.f32 8.0, %v198_v23 }
 0x203   :  { %293 = vrcp.f32 %v200_v24 }
 0x20c   :  { %v292_v25 = vpop.eup %291 }
 0x20d   :  { %v203_v26 = vmul.f32 %v292_v25, %v288_v17 }
 0x20f   :  { %v205_v27 = vsel %vm180_vm2, %v203_v26, 0.0 }
 0x210   :  { %v294_v28 = vpop.eup %293  ;;  %v206_v29 = vrot.slane %v205_v27, 4 }
 0x211   :  { %v204_v30 = vmul.f32 %v294_v28, %v290_v19 }
 0x212   :  { %v207_v31 = vadd.f32 %v206_v29, %v205_v27 }
 0x213   :  { %v212_v32 = vsel %vm180_vm2, %v204_v30, 0.0 }
 0x214   :  { %v208_v33 = vrot.slane %v207_v31, 2  ;;  %v213_v34 = vrot.slane %v212_v32, 4 }
 0x216   :  { %v209_v35 = vadd.f32 %v208_v33, %v207_v31  ;;  %v214_v36 = vadd.f32 %v213_v34, %v212_v32 }
 0x218   :  { %v210_v37 = vrot.slane %v209_v35, 1  ;;  %v215_v38 = vrot.slane %v214_v36, 2 }
 0x21a   :  { %v211_v39 = vadd.f32 %v210_v37, %v209_v35  ;;  %v216_v40 = vadd.f32 %v215_v38, %v214_v36 }
 0x21c   :  { %220 = vbcast.lane.b32.xlu0 %v211_v39, 256  ;;  %v217_v41 = vrot.slane %v216_v40, 1 }
 0x21e   :  { %v218_v42 = vadd.f32 %v217_v41, %v216_v40 }
 0x220   :  { %223 = vbcast.lane.b32.xlu1 %v218_v42, 256 }
 0x28e   :  { %v221_v43 = vpop.permute.xlu0 %220 }
 0x28f   :  { %v225_v44 = vmul.f32 %v221_v43, %v23_v1 }
 0x291   :  { %v227_v45 = vsel %vm27_vm1, %v225_v44, 0.0 }
 0x292   :  { %v228_v46 = vrot.slane %v227_v45, 4  ;;  %v224_v47 = vpop.permute.xlu1 %223 }
 0x293   :  { %v226_v48 = vmul.f32 %v224_v47, %v24_v2 }
 0x294   :  { %v229_v49 = vadd.f32 %v228_v46, %v227_v45 }
 0x295   :  { %v234_v50 = vsel %vm27_vm1, %v226_v48, 0.0 }
 0x296   :  { %v230_v51 = vrot.slane %v229_v49, 2  ;;  %v235_v52 = vrot.slane %v234_v50, 4 }
 0x298   :  { %v231_v53 = vadd.f32 %v230_v51, %v229_v49  ;;  %v236_v54 = vadd.f32 %v235_v52, %v234_v50 }
 0x29a   :  { %v237_v55 = vrot.slane %v236_v54, 2  ;;  %v232_v56 = vrot.slane %v231_v53, 1 }
 0x29c   :  { %v238_v57 = vadd.f32 %v237_v55, %v236_v54  ;;  %v233_v59 = vadd.f32 %v232_v56, %v231_v53 }
 0x29e   :  { %v239_v58 = vrot.slane %v238_v57, 1 }
 0x2a0   :  { %v240_v60 = vadd.f32 %v239_v58, %v238_v57 }
 0x2a2   :  { %v244_v61 = vsel %vm243_vm3, %v240_v60, %v233_v59 }
 0x2a3   :  { %247 = vst.msk [vmem:[#allocation5] sm:$0x3] %vm246_vm4, %v244_v61 }
 0x2a4   :  { %326 = shalt.err (!%p323_p9)
}
 0x2a5   :  { %257 = dma.vmem_to_hbm [thread:$0]  %s255_s13, 32, %s374_s1, [#allocation4]  }
 0x2a6   :  { %337 = dma.done.wait [#allocation4], 32  }
 0x2a7   :  { %338 = vsyncadd [#allocation4], 4294967264 }
 0x2a8   :  { %261 = vsyncpa [#allocation3], 1 }
 0x2a9   :  { %262 = vsyncpa [#allocation4], 1 }

</bundles_post_ra>
